<compile_context>
chip_gen: v5e
topology: v5e:2x2
jax: 0.10.0
libtpu: 0.0.40
codegen_flags: <defaults>
</compile_context>

<pallas_src>
import math

import jax
import jax.numpy as jnp
from jax.experimental import pallas as pl
from jax.experimental.pallas import tpu as pltpu


def gen_gemm_weight(weight: jnp.ndarray, T: int, order: int) -> jnp.ndarray:
    """Banded causal weight: W[t, s] = weight[order-1-(t-s)] for 0 <= t-s < order."""
    t = jnp.arange(T)[:, None]
    s = jnp.arange(T)[None, :]
    d = t - s
    valid = (d >= 0) & (d < order)
    idx = jnp.clip(order - 1 - d, 0, order - 1)
    return jnp.where(valid, weight[idx], jnp.float32(0.0))


def psn_kernel(thr_ref, w_ref, x_ref, o_ref):
    # thr_ref: (1,1) SMEM scalar (threshold; added before the compare for exact
    #          parity with `h + threshold >= 0`)
    # w_ref:   (R, R)  block-diagonal kron(I_TB, W), resident across the grid
    # x_ref:   (R, TF) lane-dense input tile (R = TB*T rows of the [B*T, F] slab)
    h = jnp.dot(w_ref[...], x_ref[...], preferred_element_type=jnp.float32)
    o_ref[...] = (h + thr_ref[0, 0] >= 0.0).astype(o_ref.dtype)


def masked_sliding_psn(x_seq, weight, threshold, order: int, out_dtype=None):
    """Forward pass of MaskedSlidingPSN. x_seq: [B, T, *feature_dims]."""
    B, T = int(x_seq.shape[0]), int(x_seq.shape[1])
    feat = 1
    for d in x_seq.shape[2:]:
        feat *= int(d)
    if out_dtype is None:
        out_dtype = x_seq.dtype  # module parity; bf16/int8 are lossless for {0,1} spikes

    # [B, T, *feat] -> [B*T, F]: free reshape, no copy, no dtype upcast.
    x2d = x_seq.reshape(B * T, feat)
    if x2d.dtype == jnp.bfloat16:
        compute_dtype = jnp.bfloat16        # MXU takes bf16 operands, f32 accumulation
    else:
        if x2d.dtype != jnp.float32:
            x2d = x2d.astype(jnp.float32)
        compute_dtype = jnp.float32

    x_item = jnp.dtype(x2d.dtype).itemsize
    out_item = jnp.dtype(out_dtype).itemsize
    w_item = jnp.dtype(compute_dtype).itemsize

    # ---- tile selection ----------------------------------------------------
    # Lane (feature) tile: one full block if it fits, else 4096 lanes (multiple
    # of 128).  cdiv + partial last block -> no wrapper padding, no wasted HBM.
    TF_MAX = 4096
    tf = feat if feat <= TF_MAX else TF_MAX

    # Row (batch*time) tile: block TB batch elements per step so the per-step
    # payload reaches ~1 MiB in + ~1 MiB out, capped at 128 rows so the
    # block-diagonal matmul stays far under the HBM roofline on all chips.
    ROWS_CAP = 128
    target_rows = max(8, min(ROWS_CAP, (1 << 20) // max(1, tf * x_item)))
    tb = max(1, target_rows // T)
    if tb >= B:
        tb = B                               # whole batch per step (full-dim block)
    else:
        # Keep TB*T a multiple of the sublane tile of the narrowest dtype used.
        sub = 8 * (4 // min(x_item, out_item))
        step = sub // math.gcd(T, sub)
        tb = (tb // step) * step
        if tb < step:
            tb = step
        if tb > B:
            tb = B
    rows = tb * T

    n_b = pl.cdiv(B, tb)
    n_f = pl.cdiv(feat, tf)

    # ---- constant operands ---------------------------------------------------
    w_gemm = gen_gemm_weight(weight.astype(jnp.float32), T, order)
    # Block-diagonal weight: one (rows, rows) @ (rows, tf) MXU matmul handles TB
    # batch elements at once (off-diagonal zeros are free MXU slack).
    w_big = jnp.kron(jnp.eye(tb, dtype=jnp.float32), w_gemm).astype(compute_dtype)
    thr = jnp.reshape(jnp.asarray(threshold, dtype=jnp.float32), (1, 1))

    # ---- grid / specs ----------------------------------------------------------
    # Both axes are independent; put the longer one first for a balanced
    # megacore / dual-TC split.
    if n_f > n_b:
        grid = (n_f, n_b)
        data_map = lambda f, b: (b, f)
    else:
        grid = (n_b, n_f)
        data_map = lambda b, f: (b, f)
    const_map = lambda i, j: (0, 0)

    # Honest VMEM budget: double-buffered in/out tiles + resident weight,
    # kept under v7x's 32 MiB scoped limit.
    vmem_needed = (2 * rows * tf * (x_item + out_item)
                   + rows * rows * w_item
                   + (1 << 20))
    vmem_limit = int(min(max(vmem_needed, 16 << 20), 32 << 20))

    cost = pl.CostEstimate(
        flops=2 * B * T * T * feat,
        transcendentals=0,
        bytes_accessed=B * T * feat * (x_item + out_item) + rows * rows * x_item,
    )

    out = pl.pallas_call(
        psn_kernel,
        out_shape=jax.ShapeDtypeStruct((B * T, feat), out_dtype),
        grid=grid,
        in_specs=[
            pl.BlockSpec((1, 1), const_map, memory_space=pltpu.SMEM),
            pl.BlockSpec((rows, rows), const_map),   # resident block-diag weight
            pl.BlockSpec((rows, tf), data_map),      # lane-dense x tile
        ],
        out_specs=pl.BlockSpec((rows, tf), data_map),
        compiler_params=pltpu.CompilerParams(
            dimension_semantics=("parallel", "parallel"),
            vmem_limit_bytes=vmem_limit,
        ),
        cost_estimate=cost,
    )(thr, w_big, x2d)

    return out.reshape(x_seq.shape)


def _reference(x_seq, weight, threshold, order):
    B, T = x_seq.shape[0], x_seq.shape[1]
    w_gemm = gen_gemm_weight(weight.astype(jnp.float32), T, order)
    xf = x_seq.reshape(B, T, -1).astype(jnp.float32)
    h = jnp.einsum("ts,bsf->btf", w_gemm, xf) + jnp.float32(threshold)
    return (h >= 0).astype(jnp.float32).reshape(x_seq.shape)


if __name__ == "__main__":
    order = 2
    # Deterministic parameter init (exp_init=True): weight = [..., 0.25, 0.5, 1.0]
    w_list = [1.0] * order
    for i in range(order - 2, -1, -1):
        w_list[i] = w_list[i + 1] / 2.0
    weight = jnp.array(w_list, dtype=jnp.float32)
    threshold = jnp.float32(-1.0)

    key = jax.random.PRNGKey(0)

    # Primary test: [B, T, C, H, W] = [2, 8, 4, 16, 16] (feat = 1024, lane-aligned).
    x_seq = jax.random.normal(key, (2, 8, 4, 16, 16), dtype=jnp.float32)
    out = jax.block_until_ready(masked_sliding_psn(x_seq, weight, threshold, order))
    expected = _reference(x_seq, weight, threshold, order)
    assert out.shape == x_seq.shape and out.dtype == x_seq.dtype
    assert bool(jnp.all(out == expected)), "mismatch vs reference (aligned feat)"

    # Non-128-aligned feature count exercises the partial lane-block path.
    x2 = jax.random.normal(jax.random.PRNGKey(1), (2, 8, 3, 10, 10), dtype=jnp.float32)
    out2 = jax.block_until_ready(masked_sliding_psn(x2, weight, threshold, order))
    exp2 = _reference(x2, weight, threshold, order)
    assert out2.shape == x2.shape
    assert bool(jnp.all(out2 == exp2)), "mismatch vs reference (unaligned feat)"

    # bf16 input path: fed straight to the MXU, no wrapper upcast; exact here
    # because the exp_init weights (0.5, 1.0) are powers of two.
    x3 = jax.random.normal(jax.random.PRNGKey(2), (2, 8, 4, 16, 16),
                           dtype=jnp.float32).astype(jnp.bfloat16)
    out3 = jax.block_until_ready(masked_sliding_psn(x3, weight, threshold, order))
    exp3 = _reference(x3.astype(jnp.float32), weight, threshold, order)
    assert out3.dtype == jnp.bfloat16
    assert bool(jnp.all(out3.astype(jnp.float32) == exp3)), "mismatch vs reference (bf16)"

    print("KERNEL_OK")
</pallas_src>

<mosaic_0001>
module attributes {stable_mosaic.version = 11 : i64} {
  func.func @psn_kernel(%arg0: i32, %arg1: i32, %arg2: memref<1x1xf32, #tpu.memory_space<smem>>, %arg3: memref<16x16xf32, #tpu.memory_space<vmem>>, %arg4: memref<16x1024xf32, #tpu.memory_space<vmem>>, %arg5: memref<16x1024xf32, #tpu.memory_space<vmem>>) attributes {dimension_semantics = [#tpu.dimension_semantics<parallel>, #tpu.dimension_semantics<parallel>], iteration_bounds = array<i64: 1, 1>, scalar_prefetch = 0 : i64, scratch_operands = 0 : i64, tpu.core_type = #tpu.core_type<tc>, window_params = [{transform_indices = @transform_0, window_bounds = array<i64: 1, 1>}, {pipeline_mode = #tpu.pipeline_mode<synchronous>, transform_indices = @transform_1, window_bounds = array<i64: 16, 16>}, {transform_indices = @transform_2, window_bounds = array<i64: 16, 1024>}, {transform_indices = @transform_3, window_bounds = array<i64: 16, 1024>}]} {
    %c0 = arith.constant 0 : index
    %c0_0 = arith.constant 0 : index
    %0 = vector.load %arg3[%c0, %c0_0] : memref<16x16xf32, #tpu.memory_space<vmem>>, vector<16x16xf32>
    %c0_1 = arith.constant 0 : index
    %c0_2 = arith.constant 0 : index
    %1 = vector.load %arg4[%c0_1, %c0_2] : memref<16x1024xf32, #tpu.memory_space<vmem>>, vector<16x1024xf32>
    %cst = arith.constant dense<0.000000e+00> : vector<16x1024xf32>
    %2 = tpu.matmul %0, %1, %cst {dimension_numbers = #tpu.dot_dimension_numbers<[1], [0], [0], [1], [0, 0, 1, 1], [], []>} : vector<16x16xf32>, vector<16x1024xf32>, vector<16x1024xf32> -> vector<16x1024xf32>
    %c0_3 = arith.constant 0 : index
    %c0_4 = arith.constant 0 : index
    %3 = memref.load %arg2[%c0_3, %c0_4] : memref<1x1xf32, #tpu.memory_space<smem>>
    %4 = vector.broadcast %3 : f32 to vector<16x1024xf32>
    %5 = arith.addf %2, %4 : vector<16x1024xf32>
    %cst_5 = arith.constant 0.000000e+00 : f32
    %6 = vector.broadcast %cst_5 : f32 to vector<16x1024xf32>
    %7 = arith.cmpf oge, %5, %6 : vector<16x1024xf32>
    %8 = arith.extui %7 : vector<16x1024xi1> to vector<16x1024xi32>
    %9 = arith.sitofp %8 : vector<16x1024xi32> to vector<16x1024xf32>
    %c0_6 = arith.constant 0 : index
    %c0_7 = arith.constant 0 : index
    %10 = vector.load %arg5[%c0_6, %c0_7] : memref<16x1024xf32, #tpu.memory_space<vmem>>, vector<16x1024xf32>
    tpu.vector_store %arg5[%c0_6, %c0_7], %9 {strides = array<i32>} : memref<16x1024xf32, #tpu.memory_space<vmem>>, vector<16x1024xf32>,
    return
  }
  func.func @transform_0(%arg0: i32, %arg1: i32) -> (i32, i32) {
    %c0_i32 = arith.constant 0 : i32
    %c0_i32_0 = arith.constant 0 : i32
    %c0_i32_1 = arith.constant 0 : i32
    return %c0_i32, %c0_i32_0 : i32, i32
  }
  func.func @transform_1(%arg0: i32, %arg1: i32) -> (i32, i32) {
    %c0_i32 = arith.constant 0 : i32
    %c0_i32_0 = arith.constant 0 : i32
    %c0_i32_1 = arith.constant 0 : i32
    return %c0_i32, %c0_i32_0 : i32, i32
  }
  func.func @transform_2(%arg0: i32, %arg1: i32) -> (i32, i32) {
    %c0_i32 = arith.constant 0 : i32
    return %arg0, %arg1 : i32, i32
  }
  func.func @transform_3(%arg0: i32, %arg1: i32) -> (i32, i32) {
    %c0_i32 = arith.constant 0 : i32
    return %arg0, %arg1 : i32, i32
  }
}

</mosaic_0001>

<bundles_post_ra>
// kernel: tpu_custom_call.1
= control target key start
LH: loop header
LB: loop body
LE: loop exit
PB: predicated region body
PF: predicated region fallthrough
CT: control target
= control target key end

     0   :  { %9 = vsyncpa [#allocation4], 0  ;;  %s557_s0 = inlined_call_operand.<no memory space> [shape: f32[1,1], index: 0, kind: input, shape index: {}]   ;;  %s558_s1 = inlined_call_operand.hbm [shape: f32[16,16], index: 1, kind: input, shape index: {}]   ;;  %s559_s2 = inlined_call_operand.hbm [shape: f32[16,1024], index: 2, kind: input, shape index: {}]   ;;  %s560_s3 = inlined_call_operand.hbm [shape: f32[16,1024], index: 3, kind: output, shape index: {}]  }
   0x1   :  { %10 = vsyncpa [#allocation7], 0 }
   0x2   :  { %11 = vsyncpa [#allocation5], 0  ;;  %s18_s14 = sshll.u32 %s558_s1, 4  ;;  %s461_s15 = smov [#allocation3]   ;;  %s19_s14 = int_to_ptr.hbm [resolvable:$true] %s18_s14 }
   0x3   :  { %s20_s16 = sshll.u32 %s461_s15, 4  ;;  %s31_s19 = sshll.u32 %s559_s2, 4  ;;  %s21_s16 = int_to_ptr.vmem [resolvable:$true] %s20_s16  ;;  %s32_s19 = int_to_ptr.hbm [resolvable:$true] %s31_s19 }
   0x4   :  { %s462_s20 = smov 128   ;;  %s463_s21 = smov 8  }
   0x5   :  { %26 = dma.hbm_to_vmem [thread:$0]  %s19_s14, 256, %s21_s16, [#allocation4], %s462_s20, %s462_s20, %s463_s21  }
   0x6   :  { %s464_s22 = smov [#allocation6]   ;;  %s465_s24 = smov 1024  }
   0x7   :  { %s33_s23 = sshll.u32 %s464_s22, 4  ;;  %s466_s25 = smov 64   ;;  %s34_s23 = int_to_ptr.vmem [resolvable:$true] %s33_s23 }
   0x8   :  { %39 = dma.hbm_to_vmem [thread:$0]  %s32_s19, 2048, %s34_s23, [#allocation7], %s465_s24, %s465_s24, %s466_s25  }
   0x9   :  { %455 = dma.done.wait [#allocation4], 256  }
   0xa   :  { %456 = vsyncadd [#allocation4], 4294967040 }
   0xb   :  { %457 = dma.done.wait [#allocation7], 2048  }
   0xc   :  { %458 = vsyncadd [#allocation7], 4294965248  ;;  %v60_v0 = vld [vmem:[#allocation6 + $0x50] sm:$0xff]  ;;  %v61_v1 = vld [vmem:[#allocation6 + $0x58] sm:$0xff]  ;;  %vm68_vm0 = vcmask 130048   ;;  %v517_v18 = vstv %s557_s0  ;;  %v467_v27 = vmov 0.0  }
   0xd   :  { %v52_v2 = vld [vmem:[#allocation6 + $0x10] sm:$0xff]  ;;  %135 = vmatpush.msra.mxu2 %v60_v0  ;;  %158 = vmatpush.msra.mxu3 %v61_v1  ;;  %v53_v3 = vld [vmem:[#allocation6 + $0x18] sm:$0xff]  ;;  %v58_v7 = vld [vmem:[#allocation6 + $0x40] sm:$0xff]  ;;  %s468_s0 = smov [#allocation8]   ;;  %s329_s29 = sshll.u32 %s560_s3, 4  ;;  %s330_s29 = int_to_ptr.hbm [resolvable:$true] %s329_s29 }
   0xe   :  { %v48_v4 = vld [vmem:[#allocation3] sm:$0xff]  ;;  %v65_v6 = vld [vmem:[#allocation6 + $0x78] sm:$0xff]  ;;  %v59_v8 = vld [vmem:[#allocation6 + $0x48] sm:$0xff]  ;;  %89 = vmatpush.msra.mxu0 %v58_v7  ;;  %s327_s26 = sshll.u32 %s468_s0, 4  ;;  %s328_s26 = int_to_ptr.vmem [resolvable:$true] %s327_s26 }
   0xf   :  { %v64_v5 = vld [vmem:[#allocation6 + $0x70] sm:$0xff]  ;;  %136 = vmatpush.msra.mxu2 %v52_v2  ;;  %159 = vmatpush.msra.mxu3 %v53_v3  ;;  %v50_v10 = vld [vmem:[#allocation6] sm:$0xff]  ;;  %v51_v11 = vld [vmem:[#allocation6 + $0x8] sm:$0xff] }
  0x10   :  { %347 = vmatmul.msk.f32.vlgmr.msra.gmra.mxu2 %vm68_vm0, %v48_v4  ;;  %349 = vmatmul.msk.f32.vlgmr.msra.gmra.mxu3 %vm68_vm0, %v48_v4  ;;  %v56_v9 = vld [vmem:[#allocation6 + $0x30] sm:$0xff]  ;;  %v57_v12 = vld [vmem:[#allocation6 + $0x38] sm:$0xff]  ;;  %v62_v13 = vld [vmem:[#allocation6 + $0x60] sm:$0xff] }
  0x11   :  { %227 = vmatpush.msrb.mxu2 %v64_v5  ;;  %250 = vmatpush.msrb.mxu3 %v65_v6  ;;  %v63_v14 = vld [vmem:[#allocation6 + $0x68] sm:$0xff]  ;;  %v49_v15 = vld [vmem:[#allocation3 + $0x8] sm:$0xff]  ;;  %v54_v16 = vld [vmem:[#allocation6 + $0x20] sm:$0xff] }
  0x12   :  { %112 = vmatpush.msra.mxu1 %v59_v8  ;;  %90 = vmatpush.msra.mxu0 %v50_v10  ;;  %v55_v17 = vld [vmem:[#allocation6 + $0x28] sm:$0xff] }
  0x13   :  { %228 = vmatpush.msrb.mxu2 %v56_v9  ;;  %251 = vmatpush.msrb.mxu3 %v57_v12 }
  0x14   :  { %113 = vmatpush.msra.mxu1 %v51_v11  ;;  %343 = vmatmul.msk.f32.vlgmr.msra.gmra.mxu0 %vm68_vm0, %v48_v4 }
  0x15   :  { %345 = vmatmul.msk.f32.vlgmr.msra.gmra.mxu1 %vm68_vm0, %v48_v4  ;;  %181 = vmatpush.msrb.mxu0 %v62_v13 }
  0x16   :  { %204 = vmatpush.msrb.mxu1 %v63_v14 }
  0x17   :  { %182 = vmatpush.msrb.mxu0 %v54_v16 }
  0x18   :  { %348 = vmatmul.msk.f32.gmra.mxu2 %vm68_vm0, %v49_v15  ;;  %350 = vmatmul.msk.f32.gmra.mxu3 %vm68_vm0, %v49_v15 }
  0x19   :  { %205 = vmatpush.msrb.mxu1 %v55_v17 }
  0x1c   :  { %344 = vmatmul.msk.f32.gmra.mxu0 %vm68_vm0, %v49_v15 }
  0x1d   :  { %346 = vmatmul.msk.f32.gmra.mxu1 %vm68_vm0, %v49_v15 }
  0x20   :  { %355 = vmatmul.msk.f32.vlgmr.msrb.gmra.mxu2 %vm68_vm0, %v48_v4  ;;  %357 = vmatmul.msk.f32.vlgmr.msrb.gmra.mxu3 %vm68_vm0, %v48_v4 }
  0x24   :  { %351 = vmatmul.msk.f32.vlgmr.msrb.gmra.mxu0 %vm68_vm0, %v48_v4 }
  0x25   :  { %353 = vmatmul.msk.f32.vlgmr.msrb.gmra.mxu1 %vm68_vm0, %v48_v4 }
  0x28   :  { %356 = vmatmul.msk.f32.gmra.mxu2 %vm68_vm0, %v49_v15  ;;  %358 = vmatmul.msk.f32.gmra.mxu3 %vm68_vm0, %v49_v15 }
  0x2c   :  { %352 = vmatmul.msk.f32.gmra.mxu0 %vm68_vm0, %v49_v15 }
  0x2d   :  { %354 = vmatmul.msk.f32.gmra.mxu1 %vm68_vm0, %v49_v15 }
  0x91   :  { %v92_v19 = vpop.f32.mrf.mxu0 }
  0x92   :  { %v115_v20 = vpop.f32.mrf.mxu1  ;;  %v93_v21 = vadd.f32 %v92_v19, %v517_v18 }
  0x93   :  { %v116_v22 = vadd.f32 %v115_v20, %v517_v18  ;;  %v138_v23 = vpop.f32.mrf.mxu2  ;;  %v161_v24 = vpop.f32.mrf.mxu3 }
  0x94   :  { %v139_v25 = vadd.f32 %v138_v23, %v517_v18  ;;  %v162_v26 = vadd.f32 %v161_v24, %v517_v18  ;;  %vm259_vm1 = vcmp.ge.f32.partialorder %v93_v21, 0.0 }
  0x95   :  { %vm260_vm2 = vcmp.ge.f32.partialorder %v116_v22, 0.0  ;;  %v359_v28 = vsel %vm259_vm1, 1.0, %v467_v27 }
  0x96   :  { %v360_v29 = vsel %vm260_vm2, 1.0, %v467_v27  ;;  %vm261_vm3 = vcmp.ge.f32.partialorder %v139_v25, 0.0  ;;  %vm262_vm4 = vcmp.ge.f32.partialorder %v162_v26, 0.0  ;;  %307 = vst [vmem:[#allocation8] sm:$0xff] %v359_v28 }
  0x97   :  { %v361_v30 = vsel %vm261_vm3, 1.0, %v467_v27  ;;  %v362_v31 = vsel %vm262_vm4, 1.0, %v467_v27  ;;  %308 = vst [vmem:[#allocation8 + $0x8] sm:$0xff] %v360_v29 }
  0x98   :  { %309 = vst [vmem:[#allocation8 + $0x10] sm:$0xff] %v361_v30 }
  0x99   :  { %310 = vst [vmem:[#allocation8 + $0x18] sm:$0xff] %v362_v31  ;;  %v95_v32 = vpop.f32.mrf.mxu0 }
  0x9a   :  { %v118_v33 = vpop.f32.mrf.mxu1  ;;  %v96_v34 = vadd.f32 %v95_v32, %v517_v18 }
  0x9b   :  { %v119_v35 = vadd.f32 %v118_v33, %v517_v18  ;;  %v141_v36 = vpop.f32.mrf.mxu2  ;;  %v164_v37 = vpop.f32.mrf.mxu3 }
  0x9c   :  { %v142_v38 = vadd.f32 %v141_v36, %v517_v18  ;;  %v165_v39 = vadd.f32 %v164_v37, %v517_v18  ;;  %vm267_vm5 = vcmp.ge.f32.partialorder %v96_v34, 0.0 }
  0x9d   :  { %vm268_vm6 = vcmp.ge.f32.partialorder %v119_v35, 0.0  ;;  %v367_v40 = vsel %vm267_vm5, 1.0, %v467_v27 }
  0x9e   :  { %v368_v41 = vsel %vm268_vm6, 1.0, %v467_v27  ;;  %vm269_vm7 = vcmp.ge.f32.partialorder %v142_v38, 0.0  ;;  %vm270_vm8 = vcmp.ge.f32.partialorder %v165_v39, 0.0  ;;  %315 = vst [vmem:[#allocation8 + $0x40] sm:$0xff] %v367_v40 }
  0x9f   :  { %v369_v42 = vsel %vm269_vm7, 1.0, %v467_v27  ;;  %v370_v43 = vsel %vm270_vm8, 1.0, %v467_v27  ;;  %316 = vst [vmem:[#allocation8 + $0x48] sm:$0xff] %v368_v41 }
  0xa0   :  { %317 = vst [vmem:[#allocation8 + $0x50] sm:$0xff] %v369_v42 }
  0xa1   :  { %318 = vst [vmem:[#allocation8 + $0x58] sm:$0xff] %v370_v43  ;;  %v184_v44 = vpop.f32.mrf.mxu0 }
  0xa2   :  { %v207_v45 = vpop.f32.mrf.mxu1  ;;  %v185_v46 = vadd.f32 %v184_v44, %v517_v18 }
  0xa3   :  { %v208_v47 = vadd.f32 %v207_v45, %v517_v18  ;;  %v230_v48 = vpop.f32.mrf.mxu2  ;;  %v253_v49 = vpop.f32.mrf.mxu3 }
  0xa4   :  { %v231_v50 = vadd.f32 %v230_v48, %v517_v18  ;;  %v254_v51 = vadd.f32 %v253_v49, %v517_v18  ;;  %vm263_vm9 = vcmp.ge.f32.partialorder %v185_v46, 0.0 }
  0xa5   :  { %vm264_vm10 = vcmp.ge.f32.partialorder %v208_v47, 0.0  ;;  %v363_v52 = vsel %vm263_vm9, 1.0, %v467_v27 }
  0xa6   :  { %v364_v53 = vsel %vm264_vm10, 1.0, %v467_v27  ;;  %vm265_vm11 = vcmp.ge.f32.partialorder %v231_v50, 0.0  ;;  %vm266_vm12 = vcmp.ge.f32.partialorder %v254_v51, 0.0  ;;  %311 = vst [vmem:[#allocation8 + $0x20] sm:$0xff] %v363_v52 }
  0xa7   :  { %v365_v54 = vsel %vm265_vm11, 1.0, %v467_v27  ;;  %v366_v55 = vsel %vm266_vm12, 1.0, %v467_v27  ;;  %312 = vst [vmem:[#allocation8 + $0x28] sm:$0xff] %v364_v53 }
  0xa8   :  { %313 = vst [vmem:[#allocation8 + $0x30] sm:$0xff] %v365_v54 }
  0xa9   :  { %314 = vst [vmem:[#allocation8 + $0x38] sm:$0xff] %v366_v55  ;;  %v187_v56 = vpop.f32.mrf.mxu0 }
  0xaa   :  { %v210_v57 = vpop.f32.mrf.mxu1  ;;  %v188_v58 = vadd.f32 %v187_v56, %v517_v18 }
  0xab   :  { %v211_v59 = vadd.f32 %v210_v57, %v517_v18  ;;  %v233_v60 = vpop.f32.mrf.mxu2  ;;  %v256_v61 = vpop.f32.mrf.mxu3 }
  0xac   :  { %v234_v62 = vadd.f32 %v233_v60, %v517_v18  ;;  %v257_v63 = vadd.f32 %v256_v61, %v517_v18  ;;  %vm271_vm13 = vcmp.ge.f32.partialorder %v188_v58, 0.0 }
  0xad   :  { %vm272_vm14 = vcmp.ge.f32.partialorder %v211_v59, 0.0  ;;  %v371_v0 = vsel %vm271_vm13, 1.0, %v467_v27 }
  0xae   :  { %v372_v1 = vsel %vm272_vm14, 1.0, %v467_v27  ;;  %vm273_vm15 = vcmp.ge.f32.partialorder %v234_v62, 0.0  ;;  %vm274_vm0 = vcmp.ge.f32.partialorder %v257_v63, 0.0  ;;  %319 = vst [vmem:[#allocation8 + $0x60] sm:$0xff] %v371_v0 }
  0xaf   :  { %v373_v2 = vsel %vm273_vm15, 1.0, %v467_v27  ;;  %v374_v3 = vsel %vm274_vm0, 1.0, %v467_v27  ;;  %320 = vst [vmem:[#allocation8 + $0x68] sm:$0xff] %v372_v1 }
  0xb0   :  { %321 = vst [vmem:[#allocation8 + $0x70] sm:$0xff] %v373_v2 }
  0xb1   :  { %322 = vst [vmem:[#allocation8 + $0x78] sm:$0xff] %v374_v3 }
  0xb2   :  { %335 = dma.vmem_to_hbm [thread:$0]  %s328_s26, 2048, %s330_s29, [#allocation5], %s465_s24, %s465_s24, %s466_s25  }
  0xb3   :  { %459 = dma.done.wait [#allocation5], 2048  }
  0xb4   :  { %460 = vsyncadd [#allocation5], 4294965248 }
  0xb5   :  { %340 = vsyncpa [#allocation4], 1 }
  0xb6   :  { %341 = vsyncpa [#allocation7], 1 }
  0xb7   :  { %342 = vsyncpa [#allocation5], 1 }

</bundles_post_ra>
